<compile_context>
chip_gen: v6e
topology: v6e:2x2x1
jax: 0.10.0
libtpu: 0.0.40
codegen_flags: <defaults>
</compile_context>

<pallas_src>
import functools

import jax
import jax.numpy as jnp
from jax.experimental import pallas as pl
from jax.experimental.pallas import tpu as pltpu


def _round_up(x, m):
    return (x + m - 1) // m * m


def _ban_kernel(in1_ref, in2_ref, w1_ref, b1_ref, w2_ref, b2_ref,
                mask_ref, pool_ref, bns_ref, bnb_ref,
                logit_ref, att_ref, *, h_out, V, Q, bt, apply_softmax, act):
    """Bt batch elements of BilinearAttentionLayer, fully fused.

    in1_ref: (Bt, V, d1) bf16      in2_ref: (Bt, Q, d2) bf16
    w1_ref:  (Hp, d1) bf16         w2_ref:  (Hp, d2) bf16    (Hp = pad(h_out*k, 128))
    b1_ref/b2_ref: (1, Hp) f32     mask_ref: (h_out, 1, Hp) bf16  per-head 0/1 masks
    pool_ref: (Hp, h_out) bf16     bns_ref/bnb_ref: (1, h_out) f32 folded BatchNorm
    logit_ref: (Bt, 1, h_out) f32  att_ref: (Bt, h_out*V, Q)
    """
    f32 = jnp.float32
    bf16 = jnp.bfloat16
    Hp = w1_ref.shape[0]
    d1 = in1_ref.shape[-1]
    d2 = in2_ref.shape[-1]

    def activation(z):
        return jnp.maximum(z, 0.0) if act == "ReLU" else jnp.tanh(z)

    # ---- linear1 / linear2 for all Bt elements as single MXU calls ----------
    x1 = in1_ref[...].reshape(bt * V, d1)                 # bf16 (pre-cast in wrapper)
    x2 = in2_ref[...].reshape(bt * Q, d2)
    h1_all = jax.lax.dot_general(x1, w1_ref[...], (((1,), (1,)), ((), ())),
                                 preferred_element_type=f32)
    h1_all = activation(h1_all + b1_ref[...])             # (Bt*V, Hp) f32
    h2_all = jax.lax.dot_general(x2, w2_ref[...], (((1,), (1,)), ((), ())),
                                 preferred_element_type=f32)
    h2_all = activation(h2_all + b2_ref[...])             # (Bt*Q, Hp) f32

    h1b_all = h1_all.astype(bf16)
    h2b_all = h2_all.astype(bf16)
    mask = mask_ref[...]                                   # (h_out, 1, Hp) bf16
    pool = pool_ref[...]                                   # (Hp, h_out)    bf16

    for b in range(bt):                                    # Bt is small and static
        h1 = h1_all[b * V:(b + 1) * V]                     # (V, Hp) f32
        h1b = h1b_all[b * V:(b + 1) * V]                   # (V, Hp) bf16
        h2b = h2b_all[b * Q:(b + 1) * Q]                   # (Q, Hp) bf16

        # ---- ALL h_out bilinear attention maps in ONE MXU call --------------
        m1 = (h1b[None, :, :] * mask).reshape(h_out * V, Hp)            # bf16
        att_flat = jax.lax.dot_general(m1, h2b, (((1,), (1,)), ((), ())),
                                       preferred_element_type=f32)      # (h_out*V, Q)

        if apply_softmax:
            blocks = []
            for h in range(h_out):                          # static slices only
                blk = att_flat[h * V:(h + 1) * V, :]        # (V, Q) f32
                mx = jnp.max(blk, keepdims=True)
                p = jnp.exp(blk - mx)
                s = jnp.sum(p, keepdims=True)
                blocks.append(p * pl.reciprocal(s, approx=True))   # divide on EUP
            att_out = jnp.concatenate(blocks, axis=0)       # (h_out*V, Q)
            a_sum = blocks[0]
            for blk in blocks[1:]:
                a_sum = a_sum + blk                         # (V, Q) sum over heads
        else:
            att_out = att_flat
            # heads use disjoint feature groups -> sum over heads == full matmul
            a_sum = jax.lax.dot_general(h1b, h2b, (((1,), (1,)), ((), ())),
                                        preferred_element_type=f32)     # (V, Q)

        att_ref[b] = att_out.astype(att_ref.dtype)          # single contiguous store

        # ---- attention pooling, fused over all heads (pooling is linear) ----
        #   logits[g] = sum_{f in group g} sum_{i,j} h1[i,f] * A_sum[i,j] * h2[j,f]
        m_av = jnp.dot(a_sum.astype(bf16), h2b, preferred_element_type=f32)   # (V, Hp)
        t = (h1 * m_av).astype(bf16)                                          # (V, Hp)
        per_tok = jnp.dot(t, pool, preferred_element_type=f32)                # (V, h_out)
        logits = jnp.sum(per_tok, axis=0, keepdims=True)                      # (1, h_out)

        # inference-mode BatchNorm1d folded to an affine epilogue
        logit_ref[b] = logits * bns_ref[...] + bnb_ref[...]


def bilinear_attention_forward(params, input1, input2, softmax=False,
                               att_dtype=jnp.float32, batch_block=None):
    """Full BilinearAttentionLayer forward in a single pallas_call."""
    w1, b1 = params["w1"], params["b1"]
    w2, b2 = params["w2"], params["b2"]
    bn_scale, bn_shift = params["bn_scale"], params["bn_shift"]
    h_out, k_rank = int(params["h_out"]), int(params["k"])
    act = params.get("act", "ReLU")

    f32, bf16 = jnp.float32, jnp.bfloat16
    B, V, d1 = input1.shape
    _, Q, d2 = input2.shape
    H = h_out * k_rank
    assert w1.shape == (H, d1) and w2.shape == (H, d2)

    # ---- pad the hidden (feature) dim to the 128-lane width ------------------
    Hp = _round_up(H, 128)
    w1p = jnp.zeros((Hp, d1), bf16).at[:H].set(w1.astype(bf16))
    w2p = jnp.zeros((Hp, d2), bf16).at[:H].set(w2.astype(bf16))
    b1p = jnp.zeros((1, Hp), f32).at[0, :H].set(b1.astype(f32))
    b2p = jnp.zeros((1, Hp), f32).at[0, :H].set(b2.astype(f32))

    feat = jnp.arange(Hp, dtype=jnp.int32)
    head_of_feat = jnp.where(feat < H, feat // k_rank, h_out)    # padded -> no head
    head_ids = jnp.arange(h_out, dtype=jnp.int32)
    head_mask = (head_of_feat[None, :] == head_ids[:, None]).astype(bf16)
    head_mask = head_mask.reshape(h_out, 1, Hp)                  # (h_out, 1, Hp)
    pool_mat = (head_of_feat[:, None] == head_ids[None, :]).astype(bf16)   # (Hp, h_out)

    # ---- batch blocking: amortize per-step overhead, keep >= 2 parallel steps
    if batch_block is None:
        batch_block = max(1, B // 2)                 # >= 2 grid steps (v7x: 2 TCs)
        att_bytes = h_out * V * Q * jnp.dtype(att_dtype).itemsize
        cap = max(1, (8 * 1024 * 1024) // max(att_bytes, 1))     # VMEM-friendly
        batch_block = min(batch_block, cap)
        while B % batch_block:
            batch_block -= 1
    assert B % batch_block == 0, (B, batch_block)
    bt = batch_block
    grid = (B // bt,)

    kernel = functools.partial(_ban_kernel, h_out=h_out, V=V, Q=Q, bt=bt,
                               apply_softmax=bool(softmax), act=act)

    grid_spec = pltpu.PrefetchScalarGridSpec(
        num_scalar_prefetch=0,
        grid=grid,
        in_specs=[
            pl.BlockSpec((bt, V, d1), lambda b: (b, 0, 0)),      # input1 (per block)
            pl.BlockSpec((bt, Q, d2), lambda b: (b, 0, 0)),      # input2 (per block)
            pl.BlockSpec((Hp, d1), lambda b: (0, 0)),            # W1 (VMEM resident)
            pl.BlockSpec((1, Hp), lambda b: (0, 0)),             # b1
            pl.BlockSpec((Hp, d2), lambda b: (0, 0)),            # W2
            pl.BlockSpec((1, Hp), lambda b: (0, 0)),             # b2
            pl.BlockSpec((h_out, 1, Hp), lambda b: (0, 0, 0)),   # per-head masks
            pl.BlockSpec((Hp, h_out), lambda b: (0, 0)),         # k-group pool matrix
            pl.BlockSpec((1, h_out), lambda b: (0, 0)),          # BN scale
            pl.BlockSpec((1, h_out), lambda b: (0, 0)),          # BN shift
        ],
        out_specs=[
            pl.BlockSpec((bt, 1, h_out), lambda b: (b, 0, 0)),        # logits
            pl.BlockSpec((bt, h_out * V, Q), lambda b: (b, 0, 0)),    # att (flat slab)
        ],
    )

    # Adaptive scoped-VMEM budget (v7x has only 64 MiB physical VMEM).
    block_bytes = (2 * bt * (V * d1 + Q * d2)
                   + 2 * Hp * (d1 + d2)
                   + bt * h_out * V * Q * jnp.dtype(att_dtype).itemsize)
    vmem_limit = int(min(96 * 2**20, max(32 * 2**20, 6 * block_bytes)))

    flops_per_b = (2 * V * d1 * Hp + 2 * Q * d2 * Hp            # linears
                   + 2 * (h_out * V) * Hp * Q                   # fused att maps
                   + 2 * V * Hp * Q                             # a_sum
                   + 2 * V * Q * Hp + 2 * V * Hp * h_out)       # pooling chain
    transc = B * h_out * V * Q if softmax else 0
    bytes_accessed = (2 * (input1.size + input2.size)
                      + 2 * (w1p.size + w2p.size + head_mask.size + pool_mat.size)
                      + 4 * (2 * Hp + 2 * h_out + B * h_out)
                      + jnp.dtype(att_dtype).itemsize * B * h_out * V * Q)

    logits3, att_flat = pl.pallas_call(
        kernel,
        out_shape=(jax.ShapeDtypeStruct((B, 1, h_out), jnp.float32),
                   jax.ShapeDtypeStruct((B, h_out * V, Q), att_dtype)),
        grid_spec=grid_spec,
        compiler_params=pltpu.CompilerParams(
            dimension_semantics=("parallel",),
            vmem_limit_bytes=vmem_limit),
        cost_estimate=pl.CostEstimate(flops=int(B * flops_per_b),
                                      transcendentals=int(transc),
                                      bytes_accessed=int(bytes_accessed)),
    )(input1.astype(bf16), input2.astype(bf16),
      w1p, b1p, w2p, b2p, head_mask, pool_mat,
      bn_scale.reshape(1, h_out).astype(f32), bn_shift.reshape(1, h_out).astype(f32))

    # Free (view-only) reshapes back to the module's output layout.
    return logits3.reshape(B, h_out), att_flat.reshape(B, h_out, V, Q)


def bilinear_attention_reference(params, input1, input2, softmax=False):
    """Pure-JAX reference (same inference semantics; bf16 MXU operands like kernel)."""
    w1, b1 = params["w1"], params["b1"]
    w2, b2 = params["w2"], params["b2"]
    bn_scale, bn_shift = params["bn_scale"], params["bn_shift"]
    h_out, k_rank = int(params["h_out"]), int(params["k"])
    act = params.get("act", "ReLU")
    f32, bf16 = jnp.float32, jnp.bfloat16
    hi = jax.lax.Precision.HIGHEST

    def activation(z):
        return jnp.maximum(z, 0.0) if act == "ReLU" else jnp.tanh(z)

    x1 = activation(jnp.einsum("bvd,hd->bvh", input1.astype(bf16), w1.astype(bf16),
                               preferred_element_type=f32) + b1)   # (B, V, H)
    x2 = activation(jnp.einsum("bqd,hd->bqh", input2.astype(bf16), w2.astype(bf16),
                               preferred_element_type=f32) + b2)   # (B, Q, H)

    B, V, H = x1.shape
    Q = x2.shape[1]
    x1r = x1.astype(bf16).reshape(B, V, h_out, k_rank)
    x2r = x2.astype(bf16).reshape(B, Q, h_out, k_rank)
    att = jnp.einsum("bvhc,bqhc->bhvq", x1r, x2r,
                     preferred_element_type=f32)                    # (B, h_out, V, Q)
    if softmax:
        att = jax.nn.softmax(att.reshape(B, h_out, V * Q), axis=2).reshape(B, h_out, V, Q)

    logits = jnp.zeros((B, h_out), f32)
    for h in range(h_out):
        fusion = jnp.einsum("bvf,bvq,bqf->bf", x1, att[:, h], x2, precision=hi)  # (B, H)
        # AvgPool1d(k, stride=k) * k  ==  per-k-group sum
        logits = logits + jnp.sum(fusion.reshape(B, h_out, k_rank), axis=-1)
    logits = logits * bn_scale[None, :] + bn_shift[None, :]
    return logits, att


if __name__ == "__main__":
    key = jax.random.PRNGKey(0)
    (k_in1, k_in2, k_w1, k_b1, k_w2, k_b2,
     k_g, k_beta, k_mu, k_var) = jax.random.split(key, 10)

    B, V, Q = 2, 16, 16
    d1 = d2 = 32
    h_out, k_rank = 8, 5
    H = h_out * k_rank

    bound1 = 1.0 / (d1 ** 0.5)
    bound2 = 1.0 / (d2 ** 0.5)
    params = {
        "w1": jax.random.uniform(k_w1, (H, d1), jnp.float32, -bound1, bound1),
        "b1": jax.random.uniform(k_b1, (H,), jnp.float32, -bound1, bound1),
        "w2": jax.random.uniform(k_w2, (H, d2), jnp.float32, -bound2, bound2),
        "b2": jax.random.uniform(k_b2, (H,), jnp.float32, -bound2, bound2),
        "h_out": h_out, "k": k_rank, "act": "ReLU",
    }
    gamma = 1.0 + 0.1 * jax.random.normal(k_g, (h_out,), jnp.float32)
    beta = 0.1 * jax.random.normal(k_beta, (h_out,), jnp.float32)
    r_mean = 0.1 * jax.random.normal(k_mu, (h_out,), jnp.float32)
    r_var = 1.0 + 0.2 * jax.random.uniform(k_var, (h_out,), jnp.float32)
    eps = 1e-5
    params["bn_scale"] = gamma / jnp.sqrt(r_var + eps)
    params["bn_shift"] = beta - r_mean * params["bn_scale"]

    input1 = jax.random.normal(k_in1, (B, V, d1), jnp.float32)
    input2 = jax.random.normal(k_in2, (B, Q, d2), jnp.float32)

    def max_rel_err(a, b):
        return float(jnp.max(jnp.abs(a - b)) / (1.0 + jnp.max(jnp.abs(b))))

    for use_softmax in (False, True):
        logits, att_maps = bilinear_attention_forward(params, input1, input2,
                                                      softmax=use_softmax)
        logits, att_maps = jax.block_until_ready((logits, att_maps))
        ref_logits, ref_att = bilinear_attention_reference(params, input1, input2,
                                                           softmax=use_softmax)

        assert logits.shape == (B, h_out), logits.shape
        assert att_maps.shape == (B, h_out, V, Q), att_maps.shape

        err_att = max_rel_err(att_maps, ref_att)
        err_log = max_rel_err(logits, ref_logits)
        # bf16 MXU operands (f32 accumulation) in the kernel pooling chain vs the
        # f32/HIGHEST reference einsum -> allow bf16-level tolerance on logits.
        assert err_att < 2e-2, f"att_maps mismatch (softmax={use_softmax}): {err_att}"
        assert err_log < 3e-2, f"logits mismatch (softmax={use_softmax}): {err_log}"

    print("KERNEL_OK")
</pallas_src>

<mosaic_0001>
module attributes {stable_mosaic.version = 11 : i64} {
  func.func @_ban_kernel(%arg0: i32, %arg1: memref<1x16x32xbf16, #tpu.memory_space<vmem>>, %arg2: memref<1x16x32xbf16, #tpu.memory_space<vmem>>, %arg3: memref<128x32xbf16, #tpu.memory_space<vmem>>, %arg4: memref<1x128xf32, #tpu.memory_space<vmem>>, %arg5: memref<128x32xbf16, #tpu.memory_space<vmem>>, %arg6: memref<1x128xf32, #tpu.memory_space<vmem>>, %arg7: memref<8x1x128xbf16, #tpu.memory_space<vmem>>, %arg8: memref<128x8xbf16, #tpu.memory_space<vmem>>, %arg9: memref<1x8xf32, #tpu.memory_space<vmem>>, %arg10: memref<1x8xf32, #tpu.memory_space<vmem>>, %arg11: memref<1x1x8xf32, #tpu.memory_space<vmem>>, %arg12: memref<1x128x16xf32, #tpu.memory_space<vmem>>) attributes {dimension_semantics = [#tpu.dimension_semantics<parallel>], iteration_bounds = array<i64: 2>, scalar_prefetch = 0 : i64, scratch_operands = 0 : i64, tpu.core_type = #tpu.core_type<tc>, window_params = [{transform_indices = @transform_0, window_bounds = array<i64: 1, 16, 32>}, {transform_indices = @transform_1, window_bounds = array<i64: 1, 16, 32>}, {pipeline_mode = #tpu.pipeline_mode<synchronous>, transform_indices = @transform_2, window_bounds = array<i64: 128, 32>}, {pipeline_mode = #tpu.pipeline_mode<synchronous>, transform_indices = @transform_3, window_bounds = array<i64: 1, 128>}, {pipeline_mode = #tpu.pipeline_mode<synchronous>, transform_indices = @transform_4, window_bounds = array<i64: 128, 32>}, {pipeline_mode = #tpu.pipeline_mode<synchronous>, transform_indices = @transform_5, window_bounds = array<i64: 1, 128>}, {pipeline_mode = #tpu.pipeline_mode<synchronous>, transform_indices = @transform_6, window_bounds = array<i64: 8, 1, 128>}, {pipeline_mode = #tpu.pipeline_mode<synchronous>, transform_indices = @transform_7, window_bounds = array<i64: 128, 8>}, {pipeline_mode = #tpu.pipeline_mode<synchronous>, transform_indices = @transform_8, window_bounds = array<i64: 1, 8>}, {pipeline_mode = #tpu.pipeline_mode<synchronous>, transform_indices = @transform_9, window_bounds = array<i64: 1, 8>}, {transform_indices = @transform_10, window_bounds = array<i64: 1, 1, 8>}, {transform_indices = @transform_11, window_bounds = array<i64: 1, 128, 16>}]} {
    %c0 = arith.constant 0 : index
    %c0_0 = arith.constant 0 : index
    %c0_1 = arith.constant 0 : index
    %0 = vector.load %arg1[%c0, %c0_0, %c0_1] : memref<1x16x32xbf16, #tpu.memory_space<vmem>>, vector<1x16x32xbf16>
    %1 = vector.shape_cast %0 : vector<1x16x32xbf16> to vector<16x32xbf16>
    %c0_2 = arith.constant 0 : index
    %c0_3 = arith.constant 0 : index
    %c0_4 = arith.constant 0 : index
    %2 = vector.load %arg2[%c0_2, %c0_3, %c0_4] : memref<1x16x32xbf16, #tpu.memory_space<vmem>>, vector<1x16x32xbf16>
    %3 = vector.shape_cast %2 : vector<1x16x32xbf16> to vector<16x32xbf16>
    %c0_5 = arith.constant 0 : index
    %c0_6 = arith.constant 0 : index
    %4 = vector.load %arg3[%c0_5, %c0_6] : memref<128x32xbf16, #tpu.memory_space<vmem>>, vector<128x32xbf16>
    %cst = arith.constant dense<0.000000e+00> : vector<16x128xf32>
    %5 = tpu.matmul %1, %4, %cst {dimension_numbers = #tpu.dot_dimension_numbers<[1], [1], [0], [0], [0, 0, 1, 0], [], []>} : vector<16x32xbf16>, vector<128x32xbf16>, vector<16x128xf32> -> vector<16x128xf32>
    %c0_7 = arith.constant 0 : index
    %c0_8 = arith.constant 0 : index
    %6 = vector.load %arg4[%c0_7, %c0_8] : memref<1x128xf32, #tpu.memory_space<vmem>>, vector<1x128xf32>
    %7 = vector.broadcast %6 : vector<1x128xf32> to vector<16x128xf32>
    %8 = arith.addf %5, %7 : vector<16x128xf32>
    %cst_9 = arith.constant 0.000000e+00 : f32
    %9 = vector.broadcast %cst_9 : f32 to vector<16x128xf32>
    %10 = arith.maximumf %8, %9 : vector<16x128xf32>
    %c0_10 = arith.constant 0 : index
    %c0_11 = arith.constant 0 : index
    %11 = vector.load %arg5[%c0_10, %c0_11] : memref<128x32xbf16, #tpu.memory_space<vmem>>, vector<128x32xbf16>
    %cst_12 = arith.constant dense<0.000000e+00> : vector<16x128xf32>
    %12 = tpu.matmul %3, %11, %cst_12 {dimension_numbers = #tpu.dot_dimension_numbers<[1], [1], [0], [0], [0, 0, 1, 0], [], []>} : vector<16x32xbf16>, vector<128x32xbf16>, vector<16x128xf32> -> vector<16x128xf32>
    %c0_13 = arith.constant 0 : index
    %c0_14 = arith.constant 0 : index
    %13 = vector.load %arg6[%c0_13, %c0_14] : memref<1x128xf32, #tpu.memory_space<vmem>>, vector<1x128xf32>
    %14 = vector.broadcast %13 : vector<1x128xf32> to vector<16x128xf32>
    %15 = arith.addf %12, %14 : vector<16x128xf32>
    %cst_15 = arith.constant 0.000000e+00 : f32
    %16 = vector.broadcast %cst_15 : f32 to vector<16x128xf32>
    %17 = arith.maximumf %15, %16 : vector<16x128xf32>
    %18 = arith.truncf %10 : vector<16x128xf32> to vector<16x128xbf16>
    %19 = arith.truncf %17 : vector<16x128xf32> to vector<16x128xbf16>
    %c0_16 = arith.constant 0 : index
    %c0_17 = arith.constant 0 : index
    %c0_18 = arith.constant 0 : index
    %20 = vector.load %arg7[%c0_16, %c0_17, %c0_18] : memref<8x1x128xbf16, #tpu.memory_space<vmem>>, vector<8x1x128xbf16>
    %c0_19 = arith.constant 0 : index
    %c0_20 = arith.constant 0 : index
    %21 = vector.load %arg8[%c0_19, %c0_20] : memref<128x8xbf16, #tpu.memory_space<vmem>>, vector<128x8xbf16>
    %22 = vector.shape_cast %18 : vector<16x128xbf16> to vector<1x16x128xbf16>
    %23 = vector.broadcast %22 : vector<1x16x128xbf16> to vector<8x16x128xbf16>
    %24 = vector.broadcast %20 : vector<8x1x128xbf16> to vector<8x16x128xbf16>
    %25 = arith.mulf %23, %24 : vector<8x16x128xbf16>
    %26 = vector.shape_cast %25 : vector<8x16x128xbf16> to vector<128x128xbf16>
    %cst_21 = arith.constant dense<0.000000e+00> : vector<128x16xf32>
    %27 = tpu.matmul %26, %19, %cst_21 {dimension_numbers = #tpu.dot_dimension_numbers<[1], [1], [0], [0], [0, 0, 1, 0], [], []>} : vector<128x128xbf16>, vector<16x128xbf16>, vector<128x16xf32> -> vector<128x16xf32>
    %cst_22 = arith.constant dense<0.000000e+00> : vector<16x16xf32>
    %28 = tpu.matmul %18, %19, %cst_22 {dimension_numbers = #tpu.dot_dimension_numbers<[1], [1], [0], [0], [0, 0, 1, 0], [], []>} : vector<16x128xbf16>, vector<16x128xbf16>, vector<16x16xf32> -> vector<16x16xf32>
    %c0_23 = arith.constant 0 : index
    %c0_24 = arith.constant 0 : index
    %c0_25 = arith.constant 0 : index
    %29 = vector.load %arg12[%c0_23, %c0_24, %c0_25] : memref<1x128x16xf32, #tpu.memory_space<vmem>>, vector<1x128x16xf32>
    %30 = vector.shape_cast %29 : vector<1x128x16xf32> to vector<128x16xf32>
    %31 = vector.shape_cast %27 : vector<128x16xf32> to vector<1x128x16xf32>
    tpu.vector_store %arg12[%c0_23, %c0_24, %c0_25], %31 {strides = array<i32>} : memref<1x128x16xf32, #tpu.memory_space<vmem>>, vector<1x128x16xf32>,
    %32 = arith.truncf %28 : vector<16x16xf32> to vector<16x16xbf16>
    %cst_26 = arith.constant dense<0.000000e+00> : vector<16x128xf32>
    %33 = tpu.matmul %32, %19, %cst_26 {dimension_numbers = #tpu.dot_dimension_numbers<[1], [0], [0], [1], [0, 0, 1, 1], [], []>} : vector<16x16xbf16>, vector<16x128xbf16>, vector<16x128xf32> -> vector<16x128xf32>
    %34 = arith.mulf %10, %33 : vector<16x128xf32>
    %35 = arith.truncf %34 : vector<16x128xf32> to vector<16x128xbf16>
    %cst_27 = arith.constant dense<0.000000e+00> : vector<16x8xf32>
    %36 = tpu.matmul %35, %21, %cst_27 {dimension_numbers = #tpu.dot_dimension_numbers<[1], [0], [0], [1], [0, 0, 1, 1], [], []>} : vector<16x128xbf16>, vector<128x8xbf16>, vector<16x8xf32> -> vector<16x8xf32>
    %cst_28 = arith.constant dense<0.000000e+00> : vector<8xf32>
    %37 = vector.multi_reduction <add>, %36, %cst_28 [0] : vector<16x8xf32> to vector<8xf32>
    %38 = vector.shape_cast %37 : vector<8xf32> to vector<1x8xf32>
    %c0_29 = arith.constant 0 : index
    %c0_30 = arith.constant 0 : index
    %39 = vector.load %arg9[%c0_29, %c0_30] : memref<1x8xf32, #tpu.memory_space<vmem>>, vector<1x8xf32>
    %40 = arith.mulf %38, %39 : vector<1x8xf32>
    %c0_31 = arith.constant 0 : index
    %c0_32 = arith.constant 0 : index
    %41 = vector.load %arg10[%c0_31, %c0_32] : memref<1x8xf32, #tpu.memory_space<vmem>>, vector<1x8xf32>
    %42 = arith.addf %40, %41 : vector<1x8xf32>
    %c0_33 = arith.constant 0 : index
    %c0_34 = arith.constant 0 : index
    %c0_35 = arith.constant 0 : index
    %43 = vector.load %arg11[%c0_33, %c0_34, %c0_35] : memref<1x1x8xf32, #tpu.memory_space<vmem>>, vector<1x1x8xf32>
    %44 = vector.shape_cast %43 : vector<1x1x8xf32> to vector<1x8xf32>
    %45 = vector.shape_cast %42 : vector<1x8xf32> to vector<1x1x8xf32>
    tpu.vector_store %arg11[%c0_33, %c0_34, %c0_35], %45 {strides = array<i32>} : memref<1x1x8xf32, #tpu.memory_space<vmem>>, vector<1x1x8xf32>,
    return
  }
  func.func @transform_0(%arg0: i32) -> (i32, i32, i32) {
    %c0_i32 = arith.constant 0 : i32
    %c0_i32_0 = arith.constant 0 : i32
    %c0_i32_1 = arith.constant 0 : i32
    return %arg0, %c0_i32, %c0_i32_0 : i32, i32, i32
  }
  func.func @transform_1(%arg0: i32) -> (i32, i32, i32) {
    %c0_i32 = arith.constant 0 : i32
    %c0_i32_0 = arith.constant 0 : i32
    %c0_i32_1 = arith.constant 0 : i32
    return %arg0, %c0_i32, %c0_i32_0 : i32, i32, i32
  }
  func.func @transform_2(%arg0: i32) -> (i32, i32) {
    %c0_i32 = arith.constant 0 : i32
    %c0_i32_0 = arith.constant 0 : i32
    %c0_i32_1 = arith.constant 0 : i32
    return %c0_i32, %c0_i32_0 : i32, i32
  }
  func.func @transform_3(%arg0: i32) -> (i32, i32) {
    %c0_i32 = arith.constant 0 : i32
    %c0_i32_0 = arith.constant 0 : i32
    %c0_i32_1 = arith.constant 0 : i32
    return %c0_i32, %c0_i32_0 : i32, i32
  }
  func.func @transform_4(%arg0: i32) -> (i32, i32) {
    %c0_i32 = arith.constant 0 : i32
    %c0_i32_0 = arith.constant 0 : i32
    %c0_i32_1 = arith.constant 0 : i32
    return %c0_i32, %c0_i32_0 : i32, i32
  }
  func.func @transform_5(%arg0: i32) -> (i32, i32) {
    %c0_i32 = arith.constant 0 : i32
    %c0_i32_0 = arith.constant 0 : i32
    %c0_i32_1 = arith.constant 0 : i32
    return %c0_i32, %c0_i32_0 : i32, i32
  }
  func.func @transform_6(%arg0: i32) -> (i32, i32, i32) {
    %c0_i32 = arith.constant 0 : i32
    %c0_i32_0 = arith.constant 0 : i32
    %c0_i32_1 = arith.constant 0 : i32
    %c0_i32_2 = arith.constant 0 : i32
    return %c0_i32, %c0_i32_0, %c0_i32_1 : i32, i32, i32
  }
  func.func @transform_7(%arg0: i32) -> (i32, i32) {
    %c0_i32 = arith.constant 0 : i32
    %c0_i32_0 = arith.constant 0 : i32
    %c0_i32_1 = arith.constant 0 : i32
    return %c0_i32, %c0_i32_0 : i32, i32
  }
  func.func @transform_8(%arg0: i32) -> (i32, i32) {
    %c0_i32 = arith.constant 0 : i32
    %c0_i32_0 = arith.constant 0 : i32
    %c0_i32_1 = arith.constant 0 : i32
    return %c0_i32, %c0_i32_0 : i32, i32
  }
  func.func @transform_9(%arg0: i32) -> (i32, i32) {
    %c0_i32 = arith.constant 0 : i32
    %c0_i32_0 = arith.constant 0 : i32
    %c0_i32_1 = arith.constant 0 : i32
    return %c0_i32, %c0_i32_0 : i32, i32
  }
  func.func @transform_10(%arg0: i32) -> (i32, i32, i32) {
    %c0_i32 = arith.constant 0 : i32
    %c0_i32_0 = arith.constant 0 : i32
    %c0_i32_1 = arith.constant 0 : i32
    return %arg0, %c0_i32, %c0_i32_0 : i32, i32, i32
  }
  func.func @transform_11(%arg0: i32) -> (i32, i32, i32) {
    %c0_i32 = arith.constant 0 : i32
    %c0_i32_0 = arith.constant 0 : i32
    %c0_i32_1 = arith.constant 0 : i32
    return %arg0, %c0_i32, %c0_i32_0 : i32, i32, i32
  }
}

</mosaic_0001>

<bundles_post_ra>
// kernel: tpu_custom_call.1
= control target key start
LH: loop header
LB: loop body
LE: loop exit
PB: predicated region body
PF: predicated region fallthrough
CT: control target
= control target key end

     0   :  { %17 = vsyncpa [#allocation3], 0  ;;  %s1893_s0 = inlined_call_operand.vmem [shape: bf16[2,16,32], index: 0, kind: input, shape index: {}]   ;;  %s1894_s1 = inlined_call_operand.vmem [shape: bf16[2,16,32], index: 1, kind: input, shape index: {}]   ;;  %s1895_s2 = inlined_call_operand.vmem [shape: bf16[128,32], index: 2, kind: input, shape index: {}]   ;;  %s1896_s3 = inlined_call_operand.vmem [shape: f32[1,128], index: 3, kind: input, shape index: {}]   ;;  %s1897_s4 = inlined_call_operand.vmem [shape: bf16[128,32], index: 4, kind: input, shape index: {}]   ;;  %s1898_s5 = inlined_call_operand.vmem [shape: f32[1,128], index: 5, kind: input, shape index: {}]   ;;  %s1899_s6 = inlined_call_operand.vmem [shape: bf16[8,1,128], index: 6, kind: input, shape index: {}]   ;;  %s1900_s7 = inlined_call_operand.vmem [shape: bf16[128,8], index: 7, kind: input, shape index: {}]   ;;  %s1901_s8 = inlined_call_operand.vmem [shape: f32[1,8], index: 8, kind: input, shape index: {}]   ;;  %s1902_s9 = inlined_call_operand.vmem [shape: f32[1,8], index: 9, kind: input, shape index: {}]   ;;  %s1903_s10 = inlined_call_operand.hbm [shape: f32[2,1,8], index: 10, kind: output, shape index: {0}]   ;;  %s1904_s11 = inlined_call_operand.vmem [shape: f32[2,128,16], index: 11, kind: output, shape index: {1}]  }
   0x1   :  { %19 = vsyncpa [#allocation3 + $0x1], 0  ;;  %s1579_s17 = smov 0   ;;  %s1581_s18 = smov 0  }
   0x2   :  { %s1583_s19 = smov 0   ;;  %s1585_s20 = smov 0  }
   0x3 LB: > { %1906 = sst [smem:[#allocation5_spill]] %s1510_s19  ;;  %s1600_s21 = sadd.s32 4294967295, %s1514_s20   ;;  %s1514_s20 = sphi %s1585_s20, %s1914_s20   ;;  %s1510_s19 = sphi %s1583_s19, %s1911_s19   ;;  %s1506_s18 = sphi %s1581_s18, %s1913_s18   ;;  %s1502_s17 = sphi %s1579_s17, %s1912_s17  }
   0x4   : > { %s1210_s22 = sadd.s32 4294967294, %s1514_s20   ;;  %s1604_s23 = sadd.s32 1, %s1514_s20  }
   0x5   : > { %s252_s24 = sadd.s32 1, %s1510_s19  ;;  %s249_s25 = ssub.s32 %s1514_s20, %s1604_s23 }
   0x6   : > { %p262_p0 = scmp.ne.s32.totalorder %s1510_s19, %s1506_s18  ;;  %p250_p1 = scmp.eq.s32.totalorder %s249_s25, 0 }
   0x7   : > { %p263_p2 = scmp.eq.s32.totalorder %s1600_s21, 1  ;;  %p268_p3 = scmp.ne.s32.totalorder %s1506_s18, %s1502_s17 }
   0x8   : > { %p269_p4 = scmp.eq.s32.totalorder %s1210_s22, 1  ;;  %p1213_p7 = scmp.ge.s32.totalorder %s1514_s20, 1 }
   0x9   : > { %s1615_s26 = scalar_select %p250_p1, %s1510_s19, %s252_s24  }
   0xa   : > { %p1617_p5 = por %p263_p2, %p262_p0  ;;  %p1621_p6 = por %p269_p4, %p268_p3 }
   0xb   : > { %1907 = sst [smem:[#allocation6_spill]] %s1615_s26  ;;  %p353_p8 = scmp.lt.s32.totalorder %s1514_s20, 3 }
   0xd   : > { %p354_p9 = pnand %p1213_p7, %p353_p8 }
   0xe   : > { %p402_p10 = scmp.lt.s32.totalorder (!%p354_p9), %s1600_s21, 1  ;;  %s393_s15 = sand.u32 (!%p354_p9), 1, %s1506_s18  }
   0xf   : > { %357 = sbr.rel (%p354_p9) target bundleno = 925 (0x39d), region = 60  ;;  %s1251_s25 = sshll.u32 (!%p354_p9), %s1600_s21, 4 }
  0x10   : > { %s394_s29 = scalar_lea.vmem (!%p354_p9), [#allocation2], %s393_s15  ;;  %s1518_s19 = smov (!%p354_p9), [#allocation2]  }
  0x11   : > { %s1458_s26 = sshll.u32 (!%p354_p9), %s1518_s19, 4  ;;  %s1459_s26 = int_to_ptr.vmem [resolvable:$false] %s1458_s26 }
  0x14   : > { %vm490_vm0 = vcmask 261120   ;;  %v1516_v0 = vmov 0.0   ;;  %v1428_v1 = vld [vmem:[%s1897_s4 + $0x38] sm:$0xff]   ;;  %vm1517_vm1 = vmmov 0   ;;  %v1430_v5 = vld [vmem:[%s1897_s4 + $0x30] sm:$0xff]   ;;  %v1432_v9 = vld [vmem:[%s1897_s4 + $0x28] sm:$0xff]   ;;  %v728_v35 = vlaneseq }
  0x15   : > { %1317 = vmatprep.subr.bf16.mxu1 %v1516_v0  ;;  %1297 = vmatprep.subr.bf16.mxu0 %v1516_v0  ;;  %v1429_v2 = vld [vmem:[%s1895_s2 + $0x38] sm:$0xff]   ;;  %v654_v3 = vsel %vm490_vm0, %v1428_v1, 0  ;;  %v1431_v6 = vld [vmem:[%s1895_s2 + $0x30] sm:$0xff]   ;;  %v651_v7 = vsel %vm490_vm0, %v1430_v5, 0  ;;  %v1433_v10 = vld [vmem:[%s1895_s2 + $0x28] sm:$0xff]   ;;  %s1661_s12 = scalar_select %p402_p10, %s1600_s21, 1 }
  0x16   : > { %1333 = vmatprep.mubr.msk.bf16.mxu1 %vm1517_vm1, %v1516_v0  ;;  %1313 = vmatprep.mubr.msk.bf16.mxu0 %vm1517_vm1, %v1516_v0  ;;  %v516_v4 = vsel %vm490_vm0, %v1429_v2, 0  ;;  %v513_v8 = vsel %vm490_vm0, %v1431_v6, 0  ;;  %v648_v11 = vsel %vm490_vm0, %v1432_v9, 0  ;;  %v510_v12 = vsel %vm490_vm0, %v1433_v10, 0  ;;  %v1434_v13 = vld [vmem:[%s1897_s4 + $0x20] sm:$0xff]   ;;  %v1436_v17 = vld [vmem:[%s1897_s4 + $0x18] sm:$0xff]  }
  0x17   : > { %1318 = vmatpush3.bf16.xpose.msra.mxu1 %v654_v3  ;;  %1298 = vmatpush3.bf16.xpose.msra.mxu0 %v516_v4  ;;  %s1254_s13 = sshll.u32 %s1661_s12, 3  ;;  %v1435_v14 = vld [vmem:[%s1895_s2 + $0x20] sm:$0xff]   ;;  %v645_v15 = vsel %vm490_vm0, %v1434_v13, 0  ;;  %v1437_v18 = vld [vmem:[%s1895_s2 + $0x18] sm:$0xff]   ;;  %v642_v19 = vsel %vm490_vm0, %v1436_v17, 0  ;;  %v1438_v21 = vld [vmem:[%s1897_s4 + $0x10] sm:$0xff]  }
  0x18   : > { %1319 = vmatprep.subr.bf16.mxu1 %v1516_v0  ;;  %1299 = vmatprep.subr.bf16.mxu0 %v1516_v0  ;;  %s1669_s16 = scalar_lea.vmem %s1894_s1, %s1254_s13  ;;  %s1677_s30 = scalar_lea.vmem %s1893_s0, %s1254_s13  ;;  %v507_v16 = vsel %vm490_vm0, %v1435_v14, 0  ;;  %v504_v20 = vsel %vm490_vm0, %v1437_v18, 0  ;;  %v1439_v22 = vld [vmem:[%s1895_s2 + $0x10] sm:$0xff]   ;;  %v639_v23 = vsel %vm490_vm0, %v1438_v21, 0  ;;  %v1440_v25 = vld [vmem:[%s1897_s4 + $0x8] sm:$0xff]   ;;  %v1442_v29 = vld [vmem:[%s1897_s4] sm:$0xff]  }
  0x19   : > { %v501_v24 = vsel %vm490_vm0, %v1439_v22, 0  ;;  %v1441_v26 = vld [vmem:[%s1895_s2 + $0x8] sm:$0xff]   ;;  %v636_v27 = vsel %vm490_vm0, %v1440_v25, 0  ;;  %v1443_v30 = vld [vmem:[%s1895_s2] sm:$0xff]   ;;  %v633_v31 = vsel %vm490_vm0, %v1442_v29, 0  ;;  %v729_v39 = vshrl.u32 %v728_v35, 7 }
  0x1a   : > { %v498_v28 = vsel %vm490_vm0, %v1441_v26, 0  ;;  %v495_v32 = vsel %vm490_vm0, %v1443_v30, 0  ;;  %v1444_v33 = vld [vmem:[%s1669_s16] sm:$0xff]   ;;  %v1448_v29 = vld [vmem:[%s1900_s7 + $0x28] sm:$0xff]   ;;  %s1256_s24 = sshll.u32 %s1661_s12, 7  ;;  %vm927_vm2 = vcmask 130048   ;;  %s1113_s16 = scalar_lea.hbm %s1903_s10, %s1251_s25 }
  0x1b   : > { %v1445_v34 = vld [vmem:[%s1677_s30] sm:$0xff]   ;;  %v730_v48 = vsub.s32 0, %v729_v39  ;;  %s1807_s14 = scalar_lea.vmem %s1904_s11, %s1256_s24  ;;  %vm1081_vm3 = vcmask 64512   ;;  %vm1095_vm4 = vcmask 57344   ;;  %s1098_s30 = scalar_lea.sflag [#allocation3], %s393_s15 }
  0x1c   : > { %v1220_v36 = vld [vmem:[%s1896_s3] ss:$0 sm:$0xff]  ;;  %v702_v54 = vld [vmem:[%s1899_s6 + $0x1] sm:$0x1]  ;;  %v703_v58 = vld [vmem:[%s1899_s6 + $0x2] sm:$0x1] }
  0x1d   : > { %v1231_v37 = vld [vmem:[%s1898_s5] ss:$0 sm:$0xff]  ;;  %v733_v62 = vpack.i.b16 %v702_v54, %v702_v54  ;;  %v740_v1 = vpack.i.b16 %v703_v58, %v703_v58  ;;  %v704_v5 = vld [vmem:[%s1899_s6 + $0x3] sm:$0x1]  ;;  %v705_v6 = vld [vmem:[%s1899_s6 + $0x4] sm:$0x1] }
  0x1e   : > { %v701_v41 = vld [vmem:[%s1899_s6] sm:$0x1]  ;;  %v754_v10 = vpack.i.b16 %v705_v6, %v705_v6  ;;  %v706_v13 = vld [vmem:[%s1899_s6 + $0x5] sm:$0x1]  ;;  %v707_v14 = vld [vmem:[%s1899_s6 + $0x6] sm:$0x1] }
  0x1f   : > { %1320 = vmatpush3.bf16.xpose.msra.mxu1 %v651_v7  ;;  %1300 = vmatpush3.bf16.xpose.msra.mxu0 %v513_v8  ;;  %v726_v47 = vpack.i.b16 %v701_v41, %v701_v41  ;;  %v738_v3 = vrot.slane %v733_v62, %v730_v48  ;;  %v745_v4 = vrot.slane %v740_v1, %v730_v48  ;;  %v708_v21 = vld [vmem:[%s1899_s6 + $0x7] sm:$0x1]  ;;  %s1460_s21 = scalar_lea.vmem %s1459_s26, 32 }
  0x20   : > { %1321 = vmatprep.subr.bf16.mxu1 %v1516_v0  ;;  %1301 = vmatprep.subr.bf16.mxu0 %v1516_v0  ;;  %v747_v8 = vpack.i.b16 %v704_v5, %v704_v5  ;;  %v768_v18 = vpack.i.b16 %v707_v14, %v707_v14  ;;  %v1449_v30 = vld [vmem:[%s1900_s7 + $0x20] sm:$0xff]  }
  0x21   : > { %v731_v60 = vrot.slane %v726_v47, %v730_v48  ;;  %v1453_v58 = vld [vmem:[%s1900_s7] sm:$0xff]  }
  0x27   : > { %1322 = vmatpush3.bf16.xpose.msra.mxu1 %v648_v11  ;;  %1302 = vmatpush3.bf16.xpose.msra.mxu0 %v510_v12  ;;  %v752_v11 = vrot.slane %v747_v8, %v730_v48  ;;  %v759_v12 = vrot.slane %v754_v10, %v730_v48 }
  0x28   : > { %1323 = vmatprep.subr.bf16.mxu1 %v1516_v0  ;;  %1303 = vmatprep.subr.bf16.mxu0 %v1516_v0 }
  0x2f   : > { %1324 = vmatpush3.bf16.xpose.msra.mxu1 %v645_v15  ;;  %1304 = vmatpush3.bf16.xpose.msra.mxu0 %v507_v16  ;;  %v761_v16 = vpack.i.b16 %v706_v13, %v706_v13  ;;  %v1093_v13 = vld [vmem:[%s1902_s9] sm:$0x1] }
  0x30   : > { %1325 = vmatprep.subr.bf16.mxu1 %v1516_v0  ;;  %1305 = vmatprep.subr.bf16.mxu0 %v1516_v0 }
  0x37   : > { %1326 = vmatpush3.bf16.xpose.msra.mxu1 %v642_v19  ;;  %1306 = vmatpush3.bf16.xpose.msra.mxu0 %v504_v20  ;;  %v766_v19 = vrot.slane %v761_v16, %v730_v48  ;;  %v773_v20 = vrot.slane %v768_v18, %v730_v48 }
  0x38   : > { %1327 = vmatprep.subr.bf16.mxu1 %v1516_v0  ;;  %1307 = vmatprep.subr.bf16.mxu0 %v1516_v0 }
  0x3f   : > { %1328 = vmatpush3.bf16.xpose.msra.mxu1 %v639_v23  ;;  %1308 = vmatpush3.bf16.xpose.msra.mxu0 %v501_v24  ;;  %v775_v23 = vpack.i.b16 %v708_v21, %v708_v21 }
  0x40   : > { %1329 = vmatprep.subr.bf16.mxu1 %v1516_v0  ;;  %1309 = vmatprep.subr.bf16.mxu0 %v1516_v0 }
  0x41   : > { %v780_v25 = vrot.slane %v775_v23, %v730_v48 }
  0x47   : > { %1330 = vmatpush3.bf16.xpose.msra.mxu1 %v636_v27  ;;  %1310 = vmatpush3.bf16.xpose.msra.mxu0 %v498_v28  ;;  %v1446_v27 = vld [vmem:[%s1900_s7 + $0x38] sm:$0xff]   ;;  %v1447_v28 = vld [vmem:[%s1900_s7 + $0x30] sm:$0xff]  }
  0x48   : > { %1331 = vmatprep.subr.bf16.mxu1 %v1516_v0  ;;  %1311 = vmatprep.subr.bf16.mxu0 %v1516_v0 }
  0x4f   : > { %1332 = vmatpush3.bf16.xpose.msra.mxu1 %v633_v31  ;;  %1312 = vmatpush3.bf16.xpose.msra.mxu0 %v495_v32  ;;  %v1450_v31 = vld [vmem:[%s1900_s7 + $0x18] sm:$0xff]   ;;  %v1451_v32 = vld [vmem:[%s1900_s7 + $0x10] sm:$0xff]  }
  0x50   : > { %1355 = vmatprep.subr.bf16.mxu1 %v1516_v0 }
  0x56   : > { %1334 = vmatmul.mubr.msk.bf16.vlgmr.msra.gmra.mxu1 %vm490_vm0, %v1444_v33  ;;  %1314 = vmatmul.mubr.msk.bf16.vlgmr.msra.gmra.mxu0 %vm490_vm0, %v1445_v34 }
  0x57   : > { %1357 = vmatprep.mubr.msk.bf16.mxu1 %vm1517_vm1, %v1516_v0 }
 0x116   : > { %v690_v38 = vpop.f32.mrf.mxu1  ;;  %v552_v40 = vpop.f32.mrf.mxu0 }
 0x117   : > { %v1742_v42 = vadd.f32 %v1220_v36, %v552_v40  ;;  %v691_v44 = vadd.f32 %v1231_v37, %v690_v38 }
 0x118   : > { %v1335_v43 = vpop.f32.mrf.mxu1  ;;  %v1315_v45 = vpop.f32.mrf.mxu0 }
 0x119   : > { %v559_v51 = vmax.f32 %v1742_v42, 0.0  ;;  %v697_v55 = vmax.f32 %v691_v44, 0.0 }
 0x11a   : > { %v693_v46 = vpop.f32.mrf.mxu1  ;;  %v555_v50 = vpop.f32.mrf.mxu0 }
 0x11b   : > { %v694_v49 = vadd.f32 %v1231_v37, %v693_v46  ;;  %v1745_v52 = vadd.f32 %v1220_v36, %v555_v50 }
 0x11c   : > { %v1336_v53 = vpop.f32.mrf.mxu1  ;;  %v1316_v57 = vpop.f32.mrf.mxu0 }
 0x11d   : > { %v698_v56 = vmax.f32 %v694_v49, 0.0  ;;  %v560_v59 = vmax.f32 %v1745_v52, 0.0  ;;  %v1452_v57 = vld [vmem:[%s1900_s7 + $0x8] sm:$0xff]  }
 0x11f   : > { %v700_v61 = vpack.c.bf16 %v698_v56, %v697_v55  ;;  %v699_v63 = vpack.c.bf16 %v560_v59, %v559_v51 }
 0x121   : > { %1337 = vmatprep.subr.bf16.mxu0 %v700_v61  ;;  %1356 = vmatpush3.bf16.xpose.msra.mxu1 %v700_v61  ;;  %v781_v2 = vmul.bf16 %v731_v60, %v699_v63  ;;  %v782_v7 = vmul.bf16 %v738_v3, %v699_v63  ;;  %v783_v9 = vmul.bf16 %v745_v4, %v699_v63 }
 0x122   : > { %1338 = vmatpush3.bf16.xpose.msra.mxu0 %v700_v61  ;;  %1361 = vmatprep.subr.bf16.mxu1 %v1516_v0  ;;  %v784_v15 = vmul.bf16 %v752_v11, %v699_v63  ;;  %v785_v17 = vmul.bf16 %v759_v12, %v699_v63  ;;  %v786_v22 = vmul.bf16 %v766_v19, %v699_v63 }
 0x123   : > { %1367 = vmatprep.subr.bf16.mxu0 %v1516_v0  ;;  %1339 = vmatprep.mubr.bf16.mxu0 %v781_v2  ;;  %v787_v24 = vmul.bf16 %v773_v20, %v699_v63  ;;  %v788_v26 = vmul.bf16 %v780_v25, %v699_v63 }
 0x128   : > { %1358 = vmatmul.mubr.bf16.vlgmr.msra.gmra.mxu1 %v699_v63 }
 0x129   : > { %1340 = vmatmul.mubr.bf16.vlgmr.msra.gmra.mxu0 %v782_v7  ;;  %1362 = vmatpush3.bf16.msra.mxu1 %v700_v61 }
 0x12a   : > { %1343 = vmatprep.mubr.bf16.mxu0 %v783_v9  ;;  %1363 = vmatprep.mubr.msk.bf16.mxu1 %vm1517_vm1, %v1516_v0 }
 0x12b   : > { %1368 = vmatpush3.bf16.msra.mxu0 %v1446_v27 }
 0x12c   : > { %1369 = vmatprep.subr.bf16.mxu0 %v1516_v0 }
 0x12f   : > { %1370 = vmatpush3.bf16.msra.mxu0 %v1447_v28 }
 0x130   : > { %1371 = vmatprep.subr.bf16.mxu0 %v1516_v0 }
 0x131   : > { %1344 = vmatmul.mubr.bf16.gmra.mxu0 %v784_v15 }
 0x132   : > { %1347 = vmatprep.mubr.bf16.mxu0 %v785_v17 }
 0x133   : > { %1372 = vmatpush3.bf16.msra.mxu0 %v1448_v29 }
 0x134   : > { %1373 = vmatprep.subr.bf16.mxu0 %v1516_v0 }
 0x137   : > { %1374 = vmatpush3.bf16.msra.mxu0 %v1449_v30 }
 0x138   : > { %1375 = vmatprep.subr.bf16.mxu0 %v1516_v0 }
 0x139   : > { %1348 = vmatmul.mubr.bf16.gmra.mxu0 %v786_v22 }
 0x13a   : > { %1351 = vmatprep.mubr.bf16.mxu0 %v787_v24 }
 0x13b   : > { %1376 = vmatpush3.bf16.msra.mxu0 %v1450_v31 }
 0x13c   : > { %1377 = vmatprep.subr.bf16.mxu0 %v1516_v0 }
 0x13f   : > { %1378 = vmatpush3.bf16.msra.mxu0 %v1451_v32 }
 0x140   : > { %1379 = vmatprep.subr.bf16.mxu0 %v1516_v0 }
 0x141   : > { %1352 = vmatmul.mubr.bf16.gmra.mxu0 %v788_v26 }
 0x142   : > { %1383 = vmatprep.mubr.msk.bf16.mxu0 %vm1517_vm1, %v1516_v0 }
 0x143   : > { %1380 = vmatpush3.bf16.msra.mxu0 %v1452_v57 }
 0x144   : > { %1381 = vmatprep.subr.bf16.mxu0 %v1516_v0 }
 0x147   : > { %1382 = vmatpush3.bf16.msra.mxu0 %v1453_v58 }
 0x1e8   : > { %v920_v33 = vpop.f32.mrf.mxu1 }
 0x1e9   : > { %v1341_v34 = vpop.f32.mrf.mxu0 }
 0x1ea   : > { %930 = vst.msk [vmem:[%s1807_s14 + $0x10] sm:$0xff] %vm927_vm2, %v1341_v34  ;;  %v1359_v35 = vpop.f32.mrf.mxu1 }
 0x1eb   : > { %v823_v36 = vpop.f32.mrf.mxu0 }
 0x1ec   : > { %928 = vst.msk [vmem:[%s1807_s14] sm:$0xff] %vm927_vm2, %v823_v36  ;;  %v923_v37 = vpop.f32.mrf.mxu1 }
 0x1ed   : > { %v944_v38 = vpack.c.bf16 %v923_v37, %v920_v33  ;;  %v1342_v39 = vpop.f32.mrf.mxu0 }
 0x1ee   : > { %931 = vst.msk [vmem:[%s1807_s14 + $0x18] sm:$0xff] %vm927_vm2, %v1342_v39  ;;  %v1360_v40 = vpop.f32.mrf.mxu1 }
 0x1ef   : > { %v826_v41 = vpop.f32.mrf.mxu0  ;;  %1364 = vmatmul.mubr.msk.bf16.vlgmr.msra.gmra.mxu1 %vm927_vm2, %v944_v38 }
 0x1f0   : > { %929 = vst.msk [vmem:[%s1807_s14 + $0x8] sm:$0xff] %vm927_vm2, %v826_v41 }
 0x1f1   : > { %v1345_v43 = vpop.f32.mrf.mxu0 }
 0x1f2   : > { %934 = vst.msk [vmem:[%s1807_s14 + $0x30] sm:$0xff] %vm927_vm2, %v1345_v43 }
 0x1f3   : > { %v839_v44 = vpop.f32.mrf.mxu0 }
 0x1f4   : > { %932 = vst.msk [vmem:[%s1807_s14 + $0x20] sm:$0xff] %vm927_vm2, %v839_v44 }
 0x1f5   : > { %v1346_v45 = vpop.f32.mrf.mxu0 }
 0x1f6   : > { %935 = vst.msk [vmem:[%s1807_s14 + $0x38] sm:$0xff] %vm927_vm2, %v1346_v45 }
 0x1f7   : > { %v842_v46 = vpop.f32.mrf.mxu0 }
 0x1f8   : > { %933 = vst.msk [vmem:[%s1807_s14 + $0x28] sm:$0xff] %vm927_vm2, %v842_v46 }
 0x1f9   : > { %v1349_v47 = vpop.f32.mrf.mxu0 }
 0x1fa   : > { %938 = vst.msk [vmem:[%s1807_s14 + $0x50] sm:$0xff] %vm927_vm2, %v1349_v47 }
 0x1fb   : > { %v855_v48 = vpop.f32.mrf.mxu0 }
 0x1fc   : > { %936 = vst.msk [vmem:[%s1807_s14 + $0x40] sm:$0xff] %vm927_vm2, %v855_v48 }
 0x1fd   : > { %v1350_v49 = vpop.f32.mrf.mxu0 }
 0x1fe   : > { %939 = vst.msk [vmem:[%s1807_s14 + $0x58] sm:$0xff] %vm927_vm2, %v1350_v49 }
 0x1ff   : > { %v858_v50 = vpop.f32.mrf.mxu0 }
 0x200   : > { %937 = vst.msk [vmem:[%s1807_s14 + $0x48] sm:$0xff] %vm927_vm2, %v858_v50 }
 0x201   : > { %v1353_v53 = vpop.f32.mrf.mxu0 }
 0x202   : > { %942 = vst.msk [vmem:[%s1807_s14 + $0x70] sm:$0xff] %vm927_vm2, %v1353_v53 }
 0x203   : > { %v871_v54 = vpop.f32.mrf.mxu0 }
 0x204   : > { %940 = vst.msk [vmem:[%s1807_s14 + $0x60] sm:$0xff] %vm927_vm2, %v871_v54 }
 0x205   : > { %v1354_v55 = vpop.f32.mrf.mxu0 }
 0x206   : > { %943 = vst.msk [vmem:[%s1807_s14 + $0x78] sm:$0xff] %vm927_vm2, %v1354_v55 }
 0x207   : > { %v874_v56 = vpop.f32.mrf.mxu0 }
 0x208   : > { %941 = vst.msk [vmem:[%s1807_s14 + $0x68] sm:$0xff] %vm927_vm2, %v874_v56  ;;  %s1115_s14 = sshll.u32 %s394_s29, 4  ;;  %s1116_s14 = int_to_ptr.vmem [resolvable:$true] %s1115_s14 }
 0x209   : > { %s1454_s22 = scalar_lea.vmem %s1116_s14, 16  ;;  %p1461_p0 = scmp.lt.s32.totalorder %s1116_s14, %s1459_s26 }
 0x20a   : > { %p1455_p11 = scmp.ne.s32.totalorder %s1116_s14, %s1454_s22  ;;  %p1462_p1 = scmp.lt.s32.totalorder %s1460_s21, %s1454_s22 }
 0x20c   : > { %p1456_p12 = pnand %p1455_p11, %p1617_p5  ;;  %p1463_p2 = por %p1462_p1, %p1461_p0 }
 0x20e   : > { %p1457_p13 = pneg %p1456_p12 }
 0x210   : > { %p1464_p3 = pnand %p1463_p2, %p1457_p13 }
 0x2af   : > { %v982_v60 = vpop.f32.mrf.mxu1 }
 0x2b0   : > { %v989_v63 = vmul.f32 %v982_v60, %v559_v51 }
 0x2b1   : > { %v1365_v61 = vpop.f32.mrf.mxu1 }
 0x2b3   : > { %v985_v62 = vpop.f32.mrf.mxu1 }
 0x2b4   : > { %v990_v1 = vmul.f32 %v985_v62, %v560_v59  ;;  %v1091_v59 = vld [vmem:[%s1901_s8] sm:$0x1] }
 0x2b5   : > { %v1366_v2 = vpop.f32.mrf.mxu1 }
 0x2b6   : > { %v991_v3 = vpack.c.bf16 %v990_v1, %v989_v63 }
 0x2b8   : > { %1384 = vmatmul.mubr.bf16.vlgmr.msra.gmra.mxu0 %v991_v3 }
 0x378   : > { %v1074_v4 = vpop.f32.mrf.mxu0 }
 0x379   : > { %v1082_v6 = vsel %vm1081_vm3, %v1074_v4, 0.0 }
 0x37a   : > { %v1385_v0 = vpop.f32.mrf.mxu0 }
 0x37c   : > { %v1077_v5 = vpop.f32.mrf.mxu0 }
 0x37d   : > { %v1083_v7 = vsel %vm1081_vm3, %v1077_v5, 0.0 }
 0x37e   : > { %v1084_v8 = vadd.f32 %v1083_v7, %v1082_v6  ;;  %v1386_v9 = vpop.f32.mrf.mxu0 }
 0x380   : > { %v1085_v10 = vrot.slane %v1084_v8, 4 }
 0x382   : > { %v1086_v11 = vadd.f32 %v1085_v10, %v1084_v8 }
 0x384   : > { %v1087_v42 = vrot.slane %v1086_v11, 2 }
 0x386   : > { %v1088_v51 = vadd.f32 %v1087_v42, %v1086_v11 }
 0x388   : > { %v1089_v52 = vrot.slane %v1088_v51, 1 }
 0x38a   : > { %v1090_v12 = vadd.f32 %v1089_v52, %v1088_v51 }
 0x38c   : > { %v1092_v14 = vmul.f32 %v1091_v59, %v1090_v12 }
 0x38e   : > { %v1094_v15 = vadd.f32 %v1093_v13, %v1092_v14 }
 0x390   : > { %1096 = vst.msk [vmem:[%s394_s29] sm:$0x1] %vm1095_vm4, %v1094_v15 }
 0x391   : > { %1467 = shalt.err (!%p1464_p3)
}
 0x392   : > { %s1468_s24 = scalar_lea.hbm %s1113_s16, 16  ;;  %s1472_s29 = scalar_lea.hbm %s1903_s10, 32 }
 0x393   : > { %p1469_p4 = scmp.ne.s32.totalorder %s1113_s16, %s1468_s24  ;;  %p1473_p9 = scmp.lt.s32.totalorder %s1113_s16, %s1903_s10 }
 0x394   : > { %p1474_p10 = scmp.lt.s32.totalorder %s1472_s29, %s1468_s24 }
 0x395   : > { %p1470_p7 = pnand %p1469_p4, %p1617_p5 }
 0x396   : > { %p1475_p11 = por %p1474_p10, %p1473_p9 }
 0x397   : > { %p1471_p8 = pneg %p1470_p7 }
 0x399   : > { %p1476_p12 = pnand %p1475_p11, %p1471_p8 }
 0x39b   : > { %1479 = shalt.err (!%p1476_p12)
}
 0x39c   : > { %1387 = dma.vmem_to_hbm [thread:$0]  (%p1617_p5), %s1116_s14, 16, %s1113_s16, %s1098_s30  }
 0x39d PF: > { %p1393_p13 = scmp.ge.s32.totalorder %s1514_s20, 2  ;;  %s1130_s22 = sand.u32 1, %s1502_s17  }
 0x39e   : > { %s1131_s19 = scalar_lea.sflag [#allocation3], %s1130_s22 }
 0x39f   : > { %p1390_p0 = pnand %p1393_p13, %p1621_p6 }
 0x3a1   : > { %p1391_p1 = pneg %p1390_p0 }
 0x3a3   : > { %1497 = dma.done.wait (%p1391_p1), %s1131_s19, 16  }
 0x3a4   : > { %1499 = vsyncadd (%p1391_p1), %s1131_s19, 4294967280  ;;  %s1910_s26 = sld [smem:[#allocation5_spill]]  ;;  %p22_p2 = scmp.ge.s32.totalorder %s1604_s23, 4  }
 0x3a5   : > { %s1911_s19 = sld [smem:[#allocation6_spill]]  ;;  %s1912_s17 = smov %s1506_s18 }
 0x3a6   : > { %s1914_s20 = smov %s1604_s23  ;;  %24 = sbr.rel (!%p22_p2) target bundleno = 3 (0x3), region = 110 }
 0x3aa   : > { %s1913_s18 = smov %s1910_s26 }
 0x3ab   :  { %1143 = vsyncpa [#allocation3], 1 }
 0x3ac   :  { %1145 = vsyncpa [#allocation3 + $0x1], 1 }

</bundles_post_ra>
